<compile_context>
chip_gen: v7x
topology: tpu7x:2x2x1
jax: 0.10.0
libtpu: 0.0.40
codegen_flags: <defaults>
</compile_context>

<pallas_src>
import jax
import jax.numpy as jnp
from jax.experimental import pallas as pl
from jax.experimental.pallas import tpu as pltpu


def additive_attention_kernel(enc_ref, h_ref, w_enc_ref, w_h_ref, b_ref, out_ref):
    enc = enc_ref[...]                      # (TB, L, Df) f32
    h = h_ref[...]                          # (TB, H)     f32
    w_enc = w_enc_ref[...]                  # (1, Df) lane-major row
    w_h = w_h_ref[...]                      # (1, H)  lane-major row
    bias = b_ref[0, 0]                      # scalar (SMEM)

    # Linear over concat(enc, h_broadcast) == two VPU multiplies + lane reduces.
    s_enc = jnp.sum(enc * w_enc[None, :, :], axis=-1)            # (TB, L)
    s_h = jnp.sum(h * w_h, axis=-1, keepdims=True)               # (TB, 1)
    scores = s_enc + s_h + bias                                  # (TB, L)

    # Numerically stable softmax over L (dim=1 of the original (B, L)).
    m = jnp.max(scores, axis=1, keepdims=True)
    e = jnp.exp(scores - m)
    denom = jnp.sum(e, axis=1, keepdims=True)
    # Exact divide: keeps each row summing to 1 to fp32 precision.
    out_ref[...] = (e / denom).astype(out_ref.dtype)


def _pick_batch_tile(B, L, Df, target_bytes=4 * 1024 * 1024):
    """Batch tile: whole batch if tiny, else a multiple of 8 giving ~4 MiB blocks.

    ~4 MiB per block x 2 (double buffering) leaves ample headroom under the
    scoped-VMEM defaults on v5e (16 MiB) and v6e/v7x (32 MiB; 64 MiB physical
    on v7x), so one tiling is portable across generations."""
    if B <= 8:
        return B
    bytes_per_row = L * Df * 4
    tb = min(B, max(8, target_bytes // max(bytes_per_row, 1)))
    return max(8, (tb // 8) * 8)


def additive_attention(encoder_out, h_prev, weight, bias):
    """encoder_out: (B, L, Df) f32; h_prev: (B, H) f32;
       weight: (1, Df+H) f32 (PyTorch nn.Linear layout, concat order enc|h);
       bias: (1,) f32."""
    B, L, Df = encoder_out.shape
    H = h_prev.shape[1]
    assert weight.shape == (1, Df + H)

    # Concat order in the PyTorch module is (encoder_out, h_prev) on dim=2.
    w_enc = weight[:, :Df]                  # (1, Df) lane-major row
    w_h = weight[:, Df:]                    # (1, H)  lane-major row
    b = bias.reshape(1, 1)                  # scalar for SMEM

    TB = _pick_batch_tile(B, L, Df)
    grid = (pl.cdiv(B, TB),)

    # TODO(synk): for production shapes with L < 128 (e.g. 49/196 image regions),
    # pad/fold L to a multiple of 128 so the output store is lane-dense instead
    # of masked vst.msk partial stores.
    return pl.pallas_call(
        additive_attention_kernel,
        out_shape=jax.ShapeDtypeStruct((B, L), jnp.float32),
        grid=grid,
        in_specs=[
            pl.BlockSpec((TB, L, Df), lambda i: (i, 0, 0)),
            pl.BlockSpec((TB, H), lambda i: (i, 0)),
            pl.BlockSpec((1, Df), lambda i: (0, 0)),
            pl.BlockSpec((1, H), lambda i: (0, 0)),
            pl.BlockSpec(memory_space=pltpu.MemorySpace.SMEM),
        ],
        out_specs=pl.BlockSpec((TB, L), lambda i: (i, 0)),
        compiler_params=pltpu.CompilerParams(
            dimension_semantics=("parallel",),
        ),
    )(encoder_out, h_prev, w_enc, w_h, b)


def additive_attention_ref(encoder_out, h_prev, weight, bias):
    B, L, Df = encoder_out.shape
    h_rep = jnp.broadcast_to(h_prev[:, None, :], (B, L, h_prev.shape[1]))
    att_input = jnp.concatenate([encoder_out, h_rep], axis=2)
    scores = jnp.einsum("blk,ok->blo", att_input, weight)[..., 0] + bias[0]
    return jax.nn.softmax(scores, axis=1)


if __name__ == "__main__":
    B, L, Df, H = 2, 8, 16, 32   # batch, num image regions, feature depth, hidden

    key = jax.random.PRNGKey(0)
    k1, k2, k3, k4 = jax.random.split(key, 4)
    encoder_out = jax.random.normal(k1, (B, L, Df), dtype=jnp.float32)
    h_prev = jax.random.normal(k2, (B, H), dtype=jnp.float32)
    # nn.Linear(hidden_size + feature_map_depth, 1): weight (1, Df+H), bias (1,)
    weight = jax.random.normal(k3, (1, Df + H), dtype=jnp.float32) * 0.1
    bias = jax.random.normal(k4, (1,), dtype=jnp.float32) * 0.1

    out = additive_attention(encoder_out, h_prev, weight, bias)
    out = jax.block_until_ready(out)

    ref = additive_attention_ref(encoder_out, h_prev, weight, bias)
    assert out.shape == (B, L)
    assert jnp.allclose(out, ref, atol=1e-5, rtol=1e-5), float(jnp.max(jnp.abs(out - ref)))
    assert jnp.allclose(jnp.sum(out, axis=1), jnp.ones((B,)), atol=1e-5)

    print("KERNEL_OK")
</pallas_src>

<mosaic_0001>
module attributes {stable_mosaic.version = 11 : i64} {
  func.func @additive_attention_kernel(%arg0: i32, %arg1: memref<2x8x16xf32, #tpu.memory_space<vmem>>, %arg2: memref<2x32xf32, #tpu.memory_space<vmem>>, %arg3: memref<1x16xf32, #tpu.memory_space<vmem>>, %arg4: memref<1x32xf32, #tpu.memory_space<vmem>>, %arg5: memref<1x1xf32, #tpu.memory_space<smem>>, %arg6: memref<2x8xf32, #tpu.memory_space<vmem>>) attributes {dimension_semantics = [#tpu.dimension_semantics<parallel>], iteration_bounds = array<i64: 1>, scalar_prefetch = 0 : i64, scratch_operands = 0 : i64, tpu.core_type = #tpu.core_type<tc>, window_params = [{transform_indices = @transform_0, window_bounds = array<i64: 2, 8, 16>}, {transform_indices = @transform_1, window_bounds = array<i64: 2, 32>}, {pipeline_mode = #tpu.pipeline_mode<synchronous>, transform_indices = @transform_2, window_bounds = array<i64: 1, 16>}, {pipeline_mode = #tpu.pipeline_mode<synchronous>, transform_indices = @transform_3, window_bounds = array<i64: 1, 32>}, {transform_indices = @transform_4, window_bounds = array<i64: 1, 1>}, {transform_indices = @transform_5, window_bounds = array<i64: 2, 8>}]} {
    %c0 = arith.constant 0 : index
    %c0_0 = arith.constant 0 : index
    %c0_1 = arith.constant 0 : index
    %0 = vector.load %arg1[%c0, %c0_0, %c0_1] : memref<2x8x16xf32, #tpu.memory_space<vmem>>, vector<2x8x16xf32>
    %c0_2 = arith.constant 0 : index
    %c0_3 = arith.constant 0 : index
    %1 = vector.load %arg2[%c0_2, %c0_3] : memref<2x32xf32, #tpu.memory_space<vmem>>, vector<2x32xf32>
    %c0_4 = arith.constant 0 : index
    %c0_5 = arith.constant 0 : index
    %2 = vector.load %arg3[%c0_4, %c0_5] : memref<1x16xf32, #tpu.memory_space<vmem>>, vector<1x16xf32>
    %c0_6 = arith.constant 0 : index
    %c0_7 = arith.constant 0 : index
    %3 = vector.load %arg4[%c0_6, %c0_7] : memref<1x32xf32, #tpu.memory_space<vmem>>, vector<1x32xf32>
    %c0_8 = arith.constant 0 : index
    %c0_9 = arith.constant 0 : index
    %4 = memref.load %arg5[%c0_8, %c0_9] : memref<1x1xf32, #tpu.memory_space<smem>>
    %5 = vector.shape_cast %2 : vector<1x16xf32> to vector<1x1x16xf32>
    %6 = vector.broadcast %5 : vector<1x1x16xf32> to vector<2x8x16xf32>
    %7 = arith.mulf %0, %6 : vector<2x8x16xf32>
    %cst = arith.constant dense<0.000000e+00> : vector<2x8xf32>
    %8 = vector.multi_reduction <add>, %7, %cst [2] : vector<2x8x16xf32> to vector<2x8xf32>
    %9 = vector.broadcast %3 : vector<1x32xf32> to vector<2x32xf32>
    %10 = arith.mulf %1, %9 : vector<2x32xf32>
    %cst_10 = arith.constant dense<0.000000e+00> : vector<2xf32>
    %11 = vector.multi_reduction <add>, %10, %cst_10 [1] : vector<2x32xf32> to vector<2xf32>
    %12 = vector.shape_cast %11 : vector<2xf32> to vector<2x1xf32>
    %13 = vector.broadcast %12 : vector<2x1xf32> to vector<2x8xf32>
    %14 = arith.addf %8, %13 : vector<2x8xf32>
    %15 = vector.broadcast %4 : f32 to vector<2x8xf32>
    %16 = arith.addf %14, %15 : vector<2x8xf32>
    %cst_11 = arith.constant dense<0xFF800000> : vector<2xf32>
    %17 = vector.multi_reduction <maximumf>, %16, %cst_11 [1] : vector<2x8xf32> to vector<2xf32>
    %18 = vector.shape_cast %17 : vector<2xf32> to vector<2x1xf32>
    %19 = vector.broadcast %18 : vector<2x1xf32> to vector<2x8xf32>
    %20 = arith.subf %16, %19 : vector<2x8xf32>
    %21 = math.exp %20 : vector<2x8xf32>
    %cst_12 = arith.constant dense<0.000000e+00> : vector<2xf32>
    %22 = vector.multi_reduction <add>, %21, %cst_12 [1] : vector<2x8xf32> to vector<2xf32>
    %23 = vector.shape_cast %22 : vector<2xf32> to vector<2x1xf32>
    %24 = vector.broadcast %23 : vector<2x1xf32> to vector<2x8xf32>
    %25 = arith.divf %21, %24 : vector<2x8xf32>
    %c0_13 = arith.constant 0 : index
    %c0_14 = arith.constant 0 : index
    %26 = vector.load %arg6[%c0_13, %c0_14] : memref<2x8xf32, #tpu.memory_space<vmem>>, vector<2x8xf32>
    tpu.vector_store %arg6[%c0_13, %c0_14], %25 {strides = array<i32>} : memref<2x8xf32, #tpu.memory_space<vmem>>, vector<2x8xf32>,
    return
  }
  func.func @transform_0(%arg0: i32) -> (i32, i32, i32) {
    %c0_i32 = arith.constant 0 : i32
    %c0_i32_0 = arith.constant 0 : i32
    %c0_i32_1 = arith.constant 0 : i32
    return %arg0, %c0_i32, %c0_i32_0 : i32, i32, i32
  }
  func.func @transform_1(%arg0: i32) -> (i32, i32) {
    %c0_i32 = arith.constant 0 : i32
    %c0_i32_0 = arith.constant 0 : i32
    return %arg0, %c0_i32 : i32, i32
  }
  func.func @transform_2(%arg0: i32) -> (i32, i32) {
    %c0_i32 = arith.constant 0 : i32
    %c0_i32_0 = arith.constant 0 : i32
    %c0_i32_1 = arith.constant 0 : i32
    return %c0_i32, %c0_i32_0 : i32, i32
  }
  func.func @transform_3(%arg0: i32) -> (i32, i32) {
    %c0_i32 = arith.constant 0 : i32
    %c0_i32_0 = arith.constant 0 : i32
    %c0_i32_1 = arith.constant 0 : i32
    return %c0_i32, %c0_i32_0 : i32, i32
  }
  func.func @transform_4(%arg0: i32) -> (i32, i32) {
    %c0_i32 = arith.constant 0 : i32
    %c0_i32_0 = arith.constant 0 : i32
    %c0_i32_1 = arith.constant 0 : i32
    return %c0_i32, %c0_i32_0 : i32, i32
  }
  func.func @transform_5(%arg0: i32) -> (i32, i32) {
    %c0_i32 = arith.constant 0 : i32
    %c0_i32_0 = arith.constant 0 : i32
    return %arg0, %c0_i32 : i32, i32
  }
}

</mosaic_0001>

<bundles_post_ra>
// kernel: tpu_custom_call.1
= control target key start
LH: loop header
LB: loop body
LE: loop exit
PB: predicated region body
PF: predicated region fallthrough
CT: control target
= control target key end

     0   :  { %11 = vsyncpa [#allocation4], 0  ;;  %s346_s0 = inlined_call_operand.hbm [shape: f32[2,8,16], index: 0, kind: input, shape index: {}]   ;;  %s347_s1 = inlined_call_operand.vmem [shape: f32[2,32], index: 1, kind: input, shape index: {}]   ;;  %s348_s2 = inlined_call_operand.vmem [shape: f32[1,16], index: 2, kind: input, shape index: {}]   ;;  %s349_s3 = inlined_call_operand.vmem [shape: f32[1,32], index: 3, kind: input, shape index: {}]   ;;  %s350_s4 = inlined_call_operand.<no memory space> [shape: f32[1,1], index: 4, kind: input, shape index: {}]   ;;  %s351_s5 = inlined_call_operand.hbm [shape: f32[2,8], index: 5, kind: output, shape index: {}]  }
   0x1   :  { %12 = vsyncpa [#allocation5], 0  ;;  %s261_s18 = smov [#allocation3]   ;;  %s213_s22 = scalar_lea.hbm %s346_s0, 256 }
   0x2   :  { %s18_s19 = sshll.u32 %s261_s18, 4  ;;  %p214_p0 = scmp.ne.s32.totalorder %s346_s0, %s213_s22  ;;  %s19_s19 = int_to_ptr.vmem [resolvable:$true] %s18_s19 }
   0x3   :  { %p217_p1 = scmp.lt.u32.totalorder %s213_s22, %s346_s0 }
   0x5   :  { %p219_p2 = pnand %p217_p1, %p214_p0 }
   0x7   :  { %222 = shalt.err (!%p219_p2)
}
   0x8   :  { %s223_s27 = scalar_lea.vmem %s19_s19, 256  ;;  %p228_p4 = scmp.lt.s32.totalorder %s19_s19, %s19_s19 }
   0x9   :  { %p224_p3 = scmp.ne.s32.totalorder %s19_s19, %s223_s27  ;;  %p229_p5 = scmp.lt.s32.totalorder %s223_s27, %s223_s27 }
   0xb   :  { %p230_p6 = por %p229_p5, %p228_p4 }
   0xd   :  { %p231_p7 = pnand %p230_p6, %p224_p3 }
   0xf   :  { %234 = shalt.err (!%p231_p7)
}
  0x10   :  { %s262_s28 = smov 128   ;;  %s263_s29 = smov 8  }
  0x11   :  { %24 = dma.hbm_to_vmem [thread:$0]  %s346_s0, 256, %s19_s19, [#allocation4], %s262_s28, %s262_s28, %s263_s29  }
  0x12   :  { %257 = dma.done.wait [#allocation4], 256  }
  0x13   :  { %258 = vsyncadd [#allocation4], 4294967040  ;;  %v69_v0 = vlaneseq  ;;  %v38_v4 = vld [vmem:[%s347_s1] sm:$0x3]  ;;  %vm64_vm0 = vcmask 254976   ;;  %v37_v6 = vld [vmem:[#allocation3 + $0x8] sm:$0xff]  ;;  %v81_v21 = vstv %s350_s4 }
  0x14   :  { %v197_v5 = vld [vmem:[%s349_s3] ss:$0 sm:$0xff]  ;;  %vm50_vm1 = vcmask 130048   ;;  %v264_v15 = vmov 0   ;;  %vm102_vm2 = vcmask 1041409   ;;  %vm105_vm3 = vcmask 58368  }
  0x15   :  { %v70_v1 = vshrl.u32 %v69_v0, 7  ;;  %v93_v2 = vand.u32 127, %v69_v0  ;;  %v63_v7 = vmul.f32 %v197_v5, %v38_v4  ;;  %v196_v8 = vld [vmem:[%s348_s2] ss:$0 sm:$0xff]  ;;  %204 = vset.pattern.permute.xlu0 %v264_v15  ;;  %203 = vset.pattern.permute.xlu1 %v264_v15  ;;  %s265_s3 = smov [#allocation6]  }
  0x16   :  { %v36_v9 = vld [vmem:[#allocation3] sm:$0xff]  ;;  %v49_v10 = vmul.f32 %v196_v8, %v37_v6  ;;  %s187_s4 = sshll.u32 %s265_s3, 4  ;;  %s188_s4 = int_to_ptr.vmem [resolvable:$true] %s187_s4 }
  0x17   :  { %v308_v3 = vsub.s32 %v93_v2, %v70_v1  ;;  %v48_v11 = vmul.f32 %v196_v8, %v36_v9  ;;  %v65_v12 = vsel %vm64_vm0, %v63_v7, 0.0  ;;  %v75_v16 = vsub.s32 1, %v70_v1  ;;  %s235_s12 = scalar_lea.vmem %s188_s4, 32  ;;  %p240_p9 = scmp.lt.s32.totalorder %s188_s4, %s188_s4 }
  0x18   :  { %66 = vadd.xlane.f32.xlu0 %v65_v12  ;;  %v54_v13 = vsel %vm50_vm1, %v49_v10, 0.0  ;;  %v71_v17 = vsub.s32 0, %v70_v1  ;;  %p236_p8 = scmp.ne.s32.totalorder %s188_s4, %s235_s12  ;;  %p241_p10 = scmp.lt.s32.totalorder %s235_s12, %s235_s12 }
  0x19   :  { %55 = vadd.xlane.f32.xlu1 %v54_v13  ;;  %v51_v14 = vsel %vm50_vm1, %v48_v11, 0.0 }
  0x1a   :  { %p242_p11 = por %p241_p10, %p240_p9 }
  0x1c   :  { %52 = vadd.xlane.f32.xlu0 %v51_v14  ;;  %p243_p12 = pnand %p242_p11, %p236_p8 }
  0xa5   :  { %v67_v18 = vpop.xlane.xlu0 %66 }
  0xa6   :  { %v76_v19 = vrot.slane %v67_v18, %v75_v16  ;;  %v56_v20 = vpop.xlane.xlu1 %55  ;;  %v72_v22 = vrot.slane %v67_v18, %v71_v17 }
  0xa8   :  { %v80_v23 = vadd.f32 %v76_v19, %v56_v20 }
  0xa9   :  { %v53_v24 = vpop.xlane.xlu0 %52 }
  0xaa   :  { %v83_v25 = vadd.f32 %v81_v21, %v80_v23  ;;  %v79_v26 = vadd.f32 %v72_v22, %v53_v24 }
  0xac   :  { %v82_v27 = vadd.f32 %v81_v21, %v79_v26  ;;  %90 = vperm.xlu0 %204, %v83_v25  }
  0xae   :  { %87 = vperm.xlu1 %203, %v82_v27  }
 0x12b   :  { %v91_v28 = vpop.permute.xlu0 %90 }
 0x12c   :  { %v101_v30 = vrot.slane %v91_v28, %v308_v3 }
 0x12d   :  { %v88_v29 = vpop.permute.xlu1 %87 }
 0x12e   :  { %v97_v31 = vrot.slane %v88_v29, %v308_v3 }
 0x130   :  { %v103_v32 = vsel %vm102_vm2, %v101_v30, %v97_v31 }
 0x131   :  { %v106_v33 = vsel %vm105_vm3, %v103_v32, -inf }
 0x132   :  { %107 = vmax.xlane.f32.xlu1 %v106_v33 }
 0x1bf   :  { %v108_v34 = vpop.xlane.xlu1 %107 }
 0x1c0   :  { %v113_v35 = vrot.slane %v108_v34, %v71_v17  ;;  %v117_v36 = vrot.slane %v108_v34, %v75_v16 }
 0x1c2   :  { %v120_v37 = vsub.f32 %v82_v27, %v113_v35  ;;  %v121_v38 = vsub.f32 %v83_v25, %v117_v36 }
 0x1c4   :  { %v122_v39 = vmul.f32 1.442695, %v120_v37  ;;  %v124_v40 = vmul.f32 1.442695, %v121_v38 }
 0x1c6   :  { %205 = vpow2.f32 %v122_v39 }
 0x1c7   :  { %207 = vpow2.f32 %v124_v40 }
 0x1d0   :  { %v206_v41 = vpop.eup %205 }
 0x1d1   :  { %129 = vperm.xlu0 %204, %v206_v41   ;;  %v208_v42 = vpop.eup %207 }
 0x1d5   :  { %132 = vperm.xlu0 %204, %v208_v42  }
 0x250   :  { %v130_v43 = vpop.permute.xlu0 %129 }
 0x251   :  { %v137_v45 = vrot.slane %v130_v43, %v308_v3 }
 0x254   :  { %v133_v44 = vpop.permute.xlu0 %132 }
 0x255   :  { %v141_v46 = vrot.slane %v133_v44, %v308_v3 }
 0x257   :  { %v142_v47 = vsel %vm102_vm2, %v141_v46, %v137_v45 }
 0x258   :  { %v144_v48 = vsel %vm105_vm3, %v142_v47, 0.0 }
 0x259   :  { %145 = vadd.xlane.f32.xlu1 %v144_v48 }
 0x2e6   :  { %v146_v49 = vpop.xlane.xlu1 %145 }
 0x2e7   :  { %v151_v50 = vrot.slane %v146_v49, %v71_v17  ;;  %v155_v51 = vrot.slane %v146_v49, %v75_v16 }
 0x2e9   :  { %209 = vrcp.f32 %v151_v50 }
 0x2ea   :  { %211 = vrcp.f32 %v155_v51 }
 0x2f3   :  { %v210_v52 = vpop.eup %209 }
 0x2f4   :  { %v212_v53 = vpop.eup %211  ;;  %v159_v54 = vmul.f32 %v210_v52, %v206_v41 }
 0x2f5   :  { %v161_v55 = vmul.f32 %v212_v53, %v208_v42 }
 0x2f6   :  { %165 = vperm.xlu0 %204, %v159_v54  }
 0x2f7   :  { %168 = vperm.xlu1 %203, %v161_v55  }
 0x375   :  { %v166_v56 = vpop.permute.xlu0 %165 }
 0x376   :  { %v169_v57 = vpop.permute.xlu1 %168  ;;  %v173_v58 = vrot.slane %v166_v56, %v308_v3 }
 0x377   :  { %v177_v59 = vrot.slane %v169_v57, %v308_v3 }
 0x379   :  { %v178_v60 = vsel %vm102_vm2, %v177_v59, %v173_v58 }
 0x37a   :  { %180 = vst.msk [vmem:[#allocation6] sm:$0x3] %vm105_vm3, %v178_v60 }
 0x37b   :  { %246 = shalt.err (!%p243_p12)
}
 0x37c   :  { %s247_s15 = scalar_lea.hbm %s351_s5, 32 }
 0x37d   :  { %p248_p13 = scmp.ne.s32.totalorder %s351_s5, %s247_s15  ;;  %p251_p0 = scmp.lt.u32.totalorder %s247_s15, %s351_s5 }
 0x37f   :  { %p253_p1 = pnand %p251_p0, %p248_p13 }
 0x381   :  { %256 = shalt.err (!%p253_p1)
}
 0x382   :  { %190 = dma.vmem_to_hbm [thread:$0]  %s188_s4, 32, %s351_s5, [#allocation5]  }
 0x383   :  { %259 = dma.done.wait [#allocation5], 32  }
 0x384   :  { %260 = vsyncadd [#allocation5], 4294967264 }
 0x385   :  { %194 = vsyncpa [#allocation4], 1 }
 0x386   :  { %195 = vsyncpa [#allocation5], 1 }

</bundles_post_ra>
